<compile_context>
chip_gen: v7x
topology: tpu7x:2x2x1
jax: 0.10.0
libtpu: 0.0.40
codegen_flags: <defaults>
</compile_context>

<pallas_src>
import functools

import jax
import jax.numpy as jnp
from jax.experimental import pallas as pl
from jax.experimental.pallas import tpu as pltpu

BN_EPS = 1e-5
_VMEM_LIMIT = 48 * 1024 * 1024  # safe on v5e/v6e (128 MiB phys) and v7x (64 MiB phys)


def _round_up(x, m):
    return (x + m - 1) // m * m


def init_project_mlp_params(key, in_dim, inner_dim, out_dim):
    """Parameter init matching the PyTorch module's shapes.

    Conv1d(in, out, k=1).weight is [out, in, 1]; stored transposed as [in, out] so kernels do
    `x @ W`.  Weights are kept in bf16 (MXU-native); biases / BN affine in f32.
    """
    k1, k2, k3, k4 = jax.random.split(key, 4)
    bound1 = 1.0 / jnp.sqrt(in_dim)
    bound2 = 1.0 / jnp.sqrt(inner_dim)
    w1 = jax.random.uniform(k1, (in_dim, inner_dim), jnp.float32, -bound1, bound1)
    b1 = jax.random.uniform(k2, (1, inner_dim), jnp.float32, -bound1, bound1)
    gamma = jnp.ones((1, inner_dim), jnp.float32)
    beta = jnp.zeros((1, inner_dim), jnp.float32)
    w2 = jax.random.uniform(k3, (inner_dim, out_dim), jnp.float32, -bound2, bound2)
    b2 = jax.random.uniform(k4, (1, out_dim), jnp.float32, -bound2, bound2)
    return (w1.astype(jnp.bfloat16), b1, gamma, beta, w2.astype(jnp.bfloat16), b2)


def _stats_kernel(x_ref, w1_ref, b1_ref, sum_ref, sumsq_ref, *, tm, n_valid, n_pad):
    """Pass 1: accumulate per-channel sum / sum-of-squares of h = x@W1 + b1 over row tiles."""
    i = pl.program_id(0)

    @pl.when(i == 0)
    def _():
        sum_ref[...] = jnp.zeros_like(sum_ref)
        sumsq_ref[...] = jnp.zeros_like(sumsq_ref)

    xt = x_ref[...].astype(jnp.bfloat16)  # bf16 MXU operand, f32 accumulation
    h = jnp.dot(xt, w1_ref[...], preferred_element_type=jnp.float32) + b1_ref[...]

    if n_pad != n_valid:  # trace-time branch: mask padded rows out of the batch statistics
        row = i * tm + jax.lax.broadcasted_iota(jnp.int32, h.shape, 0)
        h = jnp.where(row < n_valid, h, 0.0)

    sum_ref[...] += jnp.sum(h, axis=0, keepdims=True)
    sumsq_ref[...] += jnp.sum(h * h, axis=0, keepdims=True)


def _apply_kernel(x_ref, w1_ref, b1_ref, w2_ref, b2_ref, out_ref):
    """Pass 2: out = relu(x @ W1' + b1') @ W2 + b2 with BN folded into W1'/b1'."""
    xt = x_ref[...].astype(jnp.bfloat16)
    h = jnp.dot(xt, w1_ref[...], preferred_element_type=jnp.float32) + b1_ref[...]
    y = jnp.maximum(h, 0.0).astype(jnp.bfloat16)
    out = jnp.dot(y, w2_ref[...], preferred_element_type=jnp.float32) + b2_ref[...]
    out_ref[...] = out.astype(out_ref.dtype)


def project_mlp_forward(x, params, *, tm=512):
    """x: [B, L, C] or [B, C]  ->  [B, L, out_dim] or [B, out_dim]."""
    assert x.ndim in (2, 3), x.ndim
    add_dim = False
    if x.ndim == 2:
        x = x[:, None, :]
        add_dim = True
    B, L, C = x.shape
    w1, b1, gamma, beta, w2, b2 = params
    D = w1.shape[1]
    O = w2.shape[1]
    N = B * L

    # Keep x in its native dtype (no wrapper-side f32 copy); cast per-tile inside the kernel.
    x2 = x.reshape(N, C)

    # Row tiling: tile must be a multiple of 8 (sublanes); pad N up to a whole number of tiles.
    tm_eff = min(tm, _round_up(N, 8))
    n_pad = _round_up(N, tm_eff)
    if n_pad != N:
        x2 = jnp.pad(x2, ((0, n_pad - N), (0, 0)))
    grid_n = n_pad // tm_eff

    # ---------------- Pass 1: streaming per-channel sum / sum-of-squares ----------------
    stats = functools.partial(_stats_kernel, tm=tm_eff, n_valid=N, n_pad=n_pad)
    s, ss = pl.pallas_call(
        stats,
        out_shape=(jax.ShapeDtypeStruct((1, D), jnp.float32),
                   jax.ShapeDtypeStruct((1, D), jnp.float32)),
        grid=(grid_n,),
        in_specs=[
            pl.BlockSpec((tm_eff, C), lambda i: (i, 0)),   # x tile (pipelined over rows)
            pl.BlockSpec((C, D), lambda i: (0, 0)),        # W1 (resident)
            pl.BlockSpec((1, D), lambda i: (0, 0)),        # b1 (resident)
        ],
        out_specs=(pl.BlockSpec((1, D), lambda i: (0, 0)),  # resident accumulators
                   pl.BlockSpec((1, D), lambda i: (0, 0))),
        compiler_params=pltpu.CompilerParams(
            dimension_semantics=("arbitrary",),            # sequential: accumulator across tiles
            vmem_limit_bytes=_VMEM_LIMIT),
    )(x2, w1, b1)

    # --------------- Fold BN (training-mode batch stats) into layer-1 weights -----------
    inv_n = 1.0 / float(N)
    mean = s * inv_n
    var = jnp.maximum(ss * inv_n - mean * mean, 0.0)
    scale = gamma * jax.lax.rsqrt(var + BN_EPS)                       # [1, D] f32
    w1f = (w1.astype(jnp.float32) * scale).astype(jnp.bfloat16)       # [C, D] bf16
    b1f = (b1 - mean) * scale + beta                                  # [1, D] f32

    # Pad output channels to a multiple of 128 for lane-dense (unmasked) stores.
    o_pad = _round_up(O, 128)
    if o_pad != O:
        w2p = jnp.pad(w2, ((0, 0), (0, o_pad - O)))
        b2p = jnp.pad(b2, ((0, 0), (0, o_pad - O)))
    else:
        w2p, b2p = w2, b2

    # ---------------- Pass 2: fused (folded-BN) MLP apply, parallel over row tiles ------
    out = pl.pallas_call(
        _apply_kernel,
        out_shape=jax.ShapeDtypeStruct((n_pad, o_pad), jnp.float32),
        grid=(grid_n,),
        in_specs=[
            pl.BlockSpec((tm_eff, C), lambda i: (i, 0)),   # x tile
            pl.BlockSpec((C, D), lambda i: (0, 0)),        # W1' (resident)
            pl.BlockSpec((1, D), lambda i: (0, 0)),        # b1' (resident)
            pl.BlockSpec((D, o_pad), lambda i: (0, 0)),    # W2  (resident)
            pl.BlockSpec((1, o_pad), lambda i: (0, 0)),    # b2  (resident)
        ],
        out_specs=pl.BlockSpec((tm_eff, o_pad), lambda i: (i, 0)),
        compiler_params=pltpu.CompilerParams(
            dimension_semantics=("parallel",),             # independent row tiles -> megacore
            vmem_limit_bytes=_VMEM_LIMIT),
    )(x2, w1f, b1f, w2p, b2p)

    out = out[:N, :O].reshape(B, L, O)
    if add_dim:
        out = out[:, 0, :]
    return out


def project_mlp_reference(x, params):
    """Pure-JAX f32 reference of the same forward (training-mode BN)."""
    add_dim = False
    if x.ndim == 2:
        x = x[:, None, :]
        add_dim = True
    B, L, C = x.shape
    w1, b1, gamma, beta, w2, b2 = params
    w1 = w1.astype(jnp.float32)
    w2 = w2.astype(jnp.float32)
    h = x.reshape(B * L, C).astype(jnp.float32) @ w1 + b1
    mean = jnp.mean(h, axis=0, keepdims=True)
    var = jnp.mean((h - mean) ** 2, axis=0, keepdims=True)
    y = gamma * (h - mean) / jnp.sqrt(var + BN_EPS) + beta
    y = jnp.maximum(y, 0.0)
    out = (y @ w2 + b2).reshape(B, L, w2.shape[1])
    if add_dim:
        out = out[:, 0, :]
    return out


if __name__ == "__main__":
    B, L = 2, 8
    in_dim, inner_dim, out_dim = 32, 64, 32   # small analogue of (256, 4096, 256)

    key = jax.random.PRNGKey(0)
    kx, kp = jax.random.split(key)
    x = jax.random.normal(kx, (B, L, in_dim), jnp.float32)
    params = init_project_mlp_params(kp, in_dim, inner_dim, out_dim)

    out = project_mlp_forward(x, params)
    out = jax.block_until_ready(out)

    ref = project_mlp_reference(x, params)
    assert out.shape == (B, L, out_dim), out.shape
    # bf16 MXU operands (f32 accumulation) vs. pure-f32 reference -> loosened tolerance.
    assert jnp.allclose(out, ref, atol=5e-2, rtol=5e-2), float(jnp.max(jnp.abs(out - ref)))

    print("KERNEL_OK")
</pallas_src>

<mosaic_0001>
module attributes {stable_mosaic.version = 11 : i64} {
  func.func @_stats_kernel(%arg0: i32, %arg1: memref<16x32xf32, #tpu.memory_space<vmem>>, %arg2: memref<32x64xbf16, #tpu.memory_space<vmem>>, %arg3: memref<1x64xf32, #tpu.memory_space<vmem>>, %arg4: memref<1x64xf32, #tpu.memory_space<vmem>>, %arg5: memref<1x64xf32, #tpu.memory_space<vmem>>) attributes {dimension_semantics = [#tpu.dimension_semantics<arbitrary>], iteration_bounds = array<i64: 1>, scalar_prefetch = 0 : i64, scratch_operands = 0 : i64, tpu.core_type = #tpu.core_type<tc>, window_params = [{transform_indices = @transform_0, window_bounds = array<i64: 16, 32>}, {pipeline_mode = #tpu.pipeline_mode<synchronous>, transform_indices = @transform_1, window_bounds = array<i64: 32, 64>}, {pipeline_mode = #tpu.pipeline_mode<synchronous>, transform_indices = @transform_2, window_bounds = array<i64: 1, 64>}, {pipeline_mode = #tpu.pipeline_mode<synchronous>, transform_indices = @transform_3, window_bounds = array<i64: 1, 64>}, {pipeline_mode = #tpu.pipeline_mode<synchronous>, transform_indices = @transform_4, window_bounds = array<i64: 1, 64>}]} {
    %c0_i32 = arith.constant 0 : i32
    %0 = arith.cmpi eq, %arg0, %c0_i32 : i32
    %1 = arith.extui %0 : i1 to i32
    %c0_i32_0 = arith.constant 0 : i32
    %2 = arith.cmpi ne, %1, %c0_i32_0 : i32
    scf.if %2 {
      %cst_16 = arith.constant 0.000000e+00 : f32
      %21 = vector.broadcast %cst_16 : f32 to vector<1x64xf32>
      %c0_17 = arith.constant 0 : index
      %c0_18 = arith.constant 0 : index
      %22 = vector.load %arg4[%c0_17, %c0_18] : memref<1x64xf32, #tpu.memory_space<vmem>>, vector<1x64xf32>
      tpu.vector_store %arg4[%c0_17, %c0_18], %21 {strides = array<i32>} : memref<1x64xf32, #tpu.memory_space<vmem>>, vector<1x64xf32>,
      %cst_19 = arith.constant 0.000000e+00 : f32
      %23 = vector.broadcast %cst_19 : f32 to vector<1x64xf32>
      %c0_20 = arith.constant 0 : index
      %c0_21 = arith.constant 0 : index
      %24 = vector.load %arg5[%c0_20, %c0_21] : memref<1x64xf32, #tpu.memory_space<vmem>>, vector<1x64xf32>
      tpu.vector_store %arg5[%c0_20, %c0_21], %23 {strides = array<i32>} : memref<1x64xf32, #tpu.memory_space<vmem>>, vector<1x64xf32>,
    } else {
    }
    %c0 = arith.constant 0 : index
    %c0_1 = arith.constant 0 : index
    %3 = vector.load %arg1[%c0, %c0_1] : memref<16x32xf32, #tpu.memory_space<vmem>>, vector<16x32xf32>
    %4 = arith.truncf %3 : vector<16x32xf32> to vector<16x32xbf16>
    %c0_2 = arith.constant 0 : index
    %c0_3 = arith.constant 0 : index
    %5 = vector.load %arg2[%c0_2, %c0_3] : memref<32x64xbf16, #tpu.memory_space<vmem>>, vector<32x64xbf16>
    %cst = arith.constant dense<0.000000e+00> : vector<16x64xf32>
    %6 = tpu.matmul %4, %5, %cst {dimension_numbers = #tpu.dot_dimension_numbers<[1], [0], [0], [1], [0, 0, 1, 1], [], []>} : vector<16x32xbf16>, vector<32x64xbf16>, vector<16x64xf32> -> vector<16x64xf32>
    %c0_4 = arith.constant 0 : index
    %c0_5 = arith.constant 0 : index
    %7 = vector.load %arg3[%c0_4, %c0_5] : memref<1x64xf32, #tpu.memory_space<vmem>>, vector<1x64xf32>
    %8 = vector.broadcast %7 : vector<1x64xf32> to vector<16x64xf32>
    %9 = arith.addf %6, %8 : vector<16x64xf32>
    %c0_6 = arith.constant 0 : index
    %c0_7 = arith.constant 0 : index
    %10 = vector.load %arg4[%c0_6, %c0_7] : memref<1x64xf32, #tpu.memory_space<vmem>>, vector<1x64xf32>
    %cst_8 = arith.constant dense<0.000000e+00> : vector<64xf32>
    %11 = vector.multi_reduction <add>, %9, %cst_8 [0] : vector<16x64xf32> to vector<64xf32>
    %12 = vector.shape_cast %11 : vector<64xf32> to vector<1x64xf32>
    %13 = arith.addf %10, %12 : vector<1x64xf32>
    %c0_9 = arith.constant 0 : index
    %c0_10 = arith.constant 0 : index
    %14 = vector.load %arg4[%c0_9, %c0_10] : memref<1x64xf32, #tpu.memory_space<vmem>>, vector<1x64xf32>
    tpu.vector_store %arg4[%c0_9, %c0_10], %13 {strides = array<i32>} : memref<1x64xf32, #tpu.memory_space<vmem>>, vector<1x64xf32>,
    %c0_11 = arith.constant 0 : index
    %c0_12 = arith.constant 0 : index
    %15 = vector.load %arg5[%c0_11, %c0_12] : memref<1x64xf32, #tpu.memory_space<vmem>>, vector<1x64xf32>
    %16 = arith.mulf %9, %9 : vector<16x64xf32>
    %cst_13 = arith.constant dense<0.000000e+00> : vector<64xf32>
    %17 = vector.multi_reduction <add>, %16, %cst_13 [0] : vector<16x64xf32> to vector<64xf32>
    %18 = vector.shape_cast %17 : vector<64xf32> to vector<1x64xf32>
    %19 = arith.addf %15, %18 : vector<1x64xf32>
    %c0_14 = arith.constant 0 : index
    %c0_15 = arith.constant 0 : index
    %20 = vector.load %arg5[%c0_14, %c0_15] : memref<1x64xf32, #tpu.memory_space<vmem>>, vector<1x64xf32>
    tpu.vector_store %arg5[%c0_14, %c0_15], %19 {strides = array<i32>} : memref<1x64xf32, #tpu.memory_space<vmem>>, vector<1x64xf32>,
    return
  }
  func.func @transform_0(%arg0: i32) -> (i32, i32) {
    %c0_i32 = arith.constant 0 : i32
    %c0_i32_0 = arith.constant 0 : i32
    return %arg0, %c0_i32 : i32, i32
  }
  func.func @transform_1(%arg0: i32) -> (i32, i32) {
    %c0_i32 = arith.constant 0 : i32
    %c0_i32_0 = arith.constant 0 : i32
    %c0_i32_1 = arith.constant 0 : i32
    return %c0_i32, %c0_i32_0 : i32, i32
  }
  func.func @transform_2(%arg0: i32) -> (i32, i32) {
    %c0_i32 = arith.constant 0 : i32
    %c0_i32_0 = arith.constant 0 : i32
    %c0_i32_1 = arith.constant 0 : i32
    return %c0_i32, %c0_i32_0 : i32, i32
  }
  func.func @transform_3(%arg0: i32) -> (i32, i32) {
    %c0_i32 = arith.constant 0 : i32
    %c0_i32_0 = arith.constant 0 : i32
    %c0_i32_1 = arith.constant 0 : i32
    return %c0_i32, %c0_i32_0 : i32, i32
  }
  func.func @transform_4(%arg0: i32) -> (i32, i32) {
    %c0_i32 = arith.constant 0 : i32
    %c0_i32_0 = arith.constant 0 : i32
    %c0_i32_1 = arith.constant 0 : i32
    return %c0_i32, %c0_i32_0 : i32, i32
  }
}

</mosaic_0001>

<bundles_post_ra>
// kernel: tpu_custom_call.1
= control target key start
LH: loop header
LB: loop body
LE: loop exit
PB: predicated region body
PF: predicated region fallthrough
CT: control target
= control target key end

     0   :  { %10 = vsyncpa [#allocation3], 0  ;;  %s404_s0 = inlined_call_operand.hbm [shape: f32[16,32], index: 0, kind: input, shape index: {}]   ;;  %s405_s1 = inlined_call_operand.hbm [shape: bf16[32,64], index: 1, kind: input, shape index: {}]   ;;  %s406_s2 = inlined_call_operand.vmem [shape: f32[1,64], index: 2, kind: input, shape index: {}]   ;;  %s407_s3 = inlined_call_operand.hbm [shape: f32[1,64], index: 3, kind: output, shape index: {0}]   ;;  %s408_s4 = inlined_call_operand.hbm [shape: f32[1,64], index: 4, kind: output, shape index: {1}]  }
   0x1   :  { %11 = vsyncpa [#allocation6], 0 }
   0x2   :  { %12 = vsyncpa [#allocation4], 0 }
   0x3   :  { %13 = vsyncpa [#allocation9], 0  ;;  %s306_s15 = smov [#allocation2]   ;;  %s210_s19 = scalar_lea.hbm %s404_s0, 256 }
   0x4   :  { %s19_s16 = sshll.u32 %s306_s15, 4  ;;  %p211_p0 = scmp.ne.s32.totalorder %s404_s0, %s210_s19  ;;  %s20_s16 = int_to_ptr.vmem [resolvable:$true] %s19_s16 }
   0x5   :  { %p214_p1 = scmp.lt.u32.totalorder %s210_s19, %s404_s0 }
   0x7   :  { %p216_p2 = pnand %p214_p1, %p211_p0 }
   0x9   :  { %219 = shalt.err (!%p216_p2)
}
   0xa   :  { %s220_s24 = scalar_lea.vmem %s20_s16, 256  ;;  %p225_p4 = scmp.lt.s32.totalorder %s20_s16, %s20_s16 }
   0xb   :  { %p221_p3 = scmp.ne.s32.totalorder %s20_s16, %s220_s24  ;;  %p226_p5 = scmp.lt.s32.totalorder %s220_s24, %s220_s24 }
   0xd   :  { %p227_p6 = por %p226_p5, %p225_p4 }
   0xf   :  { %p228_p7 = pnand %p227_p6, %p221_p3 }
  0x11   :  { %231 = shalt.err (!%p228_p7)
}
  0x12   :  { %s307_s25 = smov 128   ;;  %s308_s26 = smov 8  }
  0x13   :  { %25 = dma.hbm_to_vmem [thread:$0]  %s404_s0, 256, %s20_s16, [#allocation3], %s307_s25, %s307_s25, %s308_s26  }
  0x14   :  { %s309_s29 = smov [#allocation5]   ;;  %s232_s7 = scalar_lea.hbm %s405_s1, 256 }
  0x15   :  { %s31_s30 = sshll.u32 %s309_s29, 4  ;;  %p233_p8 = scmp.ne.s32.totalorder %s405_s1, %s232_s7  ;;  %s32_s30 = int_to_ptr.vmem [resolvable:$true] %s31_s30 }
  0x16   :  { %p236_p9 = scmp.lt.u32.totalorder %s232_s7, %s405_s1 }
  0x18   :  { %p238_p10 = pnand %p236_p9, %p233_p8 }
  0x1a   :  { %241 = shalt.err (!%p238_p10)
}
  0x1b   :  { %s242_s12 = scalar_lea.vmem %s32_s30, 256  ;;  %p247_p12 = scmp.lt.s32.totalorder %s32_s30, %s32_s30 }
  0x1c   :  { %p243_p11 = scmp.ne.s32.totalorder %s32_s30, %s242_s12  ;;  %p248_p13 = scmp.lt.s32.totalorder %s242_s12, %s242_s12 }
  0x1e   :  { %p249_p0 = por %p248_p13, %p247_p12 }
  0x20   :  { %p250_p1 = pnand %p249_p0, %p243_p11 }
  0x22   :  { %253 = shalt.err (!%p250_p1)
}
  0x23   :  { %s310_s0 = smov 64   ;;  %s311_s13 = smov 4  }
  0x24   :  { %37 = dma.hbm_to_vmem [thread:$0]  %s405_s1, 256, %s32_s30, [#allocation6], %s310_s0, %s310_s0, %s311_s13  }
  0x25   :  { %298 = dma.done.wait [#allocation3], 256  }
  0x26   :  { %299 = vsyncadd [#allocation3], 4294967040 }
  0x27   :  { %300 = dma.done.wait [#allocation6], 256  }
  0x28   :  { %301 = vsyncadd [#allocation6], 4294967040  ;;  %v312_v0 = vmov 0.0   ;;  %vm313_vm0 = vmmov 0   ;;  %v208_v1 = vld [vmem:[#allocation5] sm:$0xff]   ;;  %v209_v2 = vld [vmem:[#allocation5 + $0x8] sm:$0xff]  }
  0x29   :  { %190 = vmatprep.subr.bf16.mxu0 %v312_v0  ;;  %194 = vmatprep.mubr.msk.bf16.mxu0 %vm313_vm0, %v312_v0  ;;  %v54_v3 = vld [vmem:[#allocation2] sm:$0xff]  ;;  %v55_v4 = vld [vmem:[#allocation2 + $0x8] sm:$0xff]  ;;  %vm80_vm1 = vcmask 261120   ;;  %vm51_vm2 = vcmask 516096   ;;  %vm126_vm3 = vcmask 523264   ;;  %s315_s18 = smov [#allocation8]  }
  0x2a   :  { %191 = vmatpush3.bf16.msra.mxu0 %v208_v1  ;;  %v56_v5 = vpack.c.bf16 %v55_v4, %v54_v3  ;;  %52 = vst.msk [vmem:[#allocation7] sm:$0x1] %vm51_vm2, %v312_v0  ;;  %53 = vst.msk [vmem:[#allocation8] sm:$0x1] %vm51_vm2, %v312_v0  ;;  %v183_v6 = vld [vmem:[%s406_s2] ss:$0 sm:$0xff] }
  0x2b   :  { %192 = vmatprep.subr.bf16.mxu0 %v312_v0  ;;  %s314_s2 = smov [#allocation7]   ;;  %s169_s19 = sshll.u32 %s315_s18, 4  ;;  %s371_s19 = int_to_ptr.vmem [resolvable:$true] %s169_s19 }
  0x2c   :  { %s159_s17 = sshll.u32 %s314_s2, 4  ;;  %s160_s17 = int_to_ptr.vmem [resolvable:$true] %s159_s17 }
  0x2d   :  { %s254_s20 = scalar_lea.vmem %s160_s17, 16  ;;  %s258_s21 = scalar_lea.vmem %s160_s17, 32 }
  0x2e   :  { %193 = vmatpush3.bf16.msra.mxu0 %v209_v2  ;;  %p255_p2 = scmp.ne.s32.totalorder %s160_s17, %s254_s20  ;;  %p259_p3 = scmp.lt.s32.totalorder %s160_s17, %s160_s17 }
  0x2f   :  { %p260_p4 = scmp.lt.s32.totalorder %s258_s21, %s254_s20 }
  0x31   :  { %195 = vmatmul.mubr.msk.bf16.vlgmr.msra.gmra.mrb[0].mxu0 %vm80_vm1, %v56_v5  ;;  %v125_v30 = vld [vmem:[#allocation7] sm:$0x1]  ;;  %v139_v33 = vld [vmem:[#allocation8] sm:$0x1]  ;;  %p261_p5 = por %p260_p4, %p259_p3 }
  0x33   :  { %p262_p6 = pnand %p261_p5, %p255_p2 }
 0x104   :  { %v118_v7 = vpop.f32.mrb[0].mxu0 }
 0x105   :  { %v119_v8 = vadd.f32 %v183_v6, %v118_v7  ;;  %v196_v9 = vpop.f32.mrb[1].mxu0 }
 0x106   :  { %v121_v10 = vpop.f32.mrb[2].mxu0 }
 0x107   :  { %v140_v11 = vmul.f32 %v119_v8, %v119_v8  ;;  %v122_v12 = vadd.f32 %v183_v6, %v121_v10  ;;  %v197_v13 = vpop.f32.mrb[3].mxu0  ;;  %v127_v14 = vsel %vm126_vm3, %v119_v8, 0.0 }
 0x109   :  { %v128_v15 = vsel %vm126_vm3, %v122_v12, 0.0  ;;  %v141_v16 = vmul.f32 %v122_v12, %v122_v12  ;;  %v142_v18 = vsel %vm126_vm3, %v140_v11, 0.0 }
 0x10a   :  { %v129_v17 = vadd.f32 %v128_v15, %v127_v14 }
 0x10b   :  { %v143_v19 = vsel %vm126_vm3, %v141_v16, 0.0 }
 0x10c   :  { %v130_v20 = vrot.slane %v129_v17, 4  ;;  %v144_v21 = vadd.f32 %v143_v19, %v142_v18 }
 0x10e   :  { %v131_v22 = vadd.f32 %v130_v20, %v129_v17  ;;  %v145_v23 = vrot.slane %v144_v21, 4 }
 0x110   :  { %v132_v24 = vrot.slane %v131_v22, 2  ;;  %v146_v25 = vadd.f32 %v145_v23, %v144_v21 }
 0x112   :  { %v133_v26 = vadd.f32 %v132_v24, %v131_v22  ;;  %v147_v27 = vrot.slane %v146_v25, 2 }
 0x114   :  { %v134_v28 = vrot.slane %v133_v26, 1  ;;  %v148_v29 = vadd.f32 %v147_v27, %v146_v25 }
 0x116   :  { %v135_v31 = vadd.f32 %v134_v28, %v133_v26  ;;  %v149_v32 = vrot.slane %v148_v29, 1 }
 0x118   :  { %v136_v34 = vadd.f32 %v135_v31, %v125_v30  ;;  %v150_v35 = vadd.f32 %v149_v32, %v148_v29 }
 0x11a   :  { %138 = vst.msk [vmem:[#allocation7] sm:$0x1] %vm51_vm2, %v136_v34  ;;  %v151_v36 = vadd.f32 %v150_v35, %v139_v33 }
 0x11b   :  { %265 = shalt.err (!%p262_p6)
}
 0x11c   :  { %s266_s24 = scalar_lea.hbm %s407_s3, 16 }
 0x11d   :  { %p267_p7 = scmp.ne.s32.totalorder %s407_s3, %s266_s24  ;;  %p270_p8 = scmp.lt.u32.totalorder %s266_s24, %s407_s3 }
 0x11f   :  { %p272_p9 = pnand %p270_p8, %p267_p7 }
 0x121   :  { %275 = shalt.err (!%p272_p9)
}
 0x122   :  { %162 = dma.vmem_to_hbm [thread:$0]  %s160_s17, 16, %s407_s3, [#allocation4]   ;;  %152 = vst.msk [vmem:[#allocation8] sm:$0x1] %vm51_vm2, %v151_v36 }
 0x123   :  { %s276_s5 = scalar_lea.vmem %s371_s19, 16  ;;  %s280_s6 = scalar_lea.vmem %s371_s19, 32 }
 0x124   :  { %p277_p10 = scmp.ne.s32.totalorder %s371_s19, %s276_s5  ;;  %p281_p11 = scmp.lt.s32.totalorder %s371_s19, %s371_s19 }
 0x125   :  { %p282_p12 = scmp.lt.s32.totalorder %s280_s6, %s276_s5 }
 0x127   :  { %p283_p13 = por %p282_p12, %p281_p11 }
 0x129   :  { %p284_p0 = pnand %p283_p13, %p277_p10 }
 0x12b   :  { %287 = shalt.err (!%p284_p0)
}
 0x12c   :  { %s288_s9 = scalar_lea.hbm %s408_s4, 16 }
 0x12d   :  { %p289_p1 = scmp.ne.s32.totalorder %s408_s4, %s288_s9  ;;  %p292_p2 = scmp.lt.u32.totalorder %s288_s9, %s408_s4 }
 0x12f   :  { %p294_p3 = pnand %p292_p2, %p289_p1 }
 0x131   :  { %297 = shalt.err (!%p294_p3)
}
 0x132   :  { %172 = dma.vmem_to_hbm [thread:$0]  %s371_s19, 16, %s408_s4, [#allocation9]  }
 0x133   :  { %302 = dma.done.wait [#allocation4], 16  }
 0x134   :  { %303 = vsyncadd [#allocation4], 4294967280 }
 0x135   :  { %304 = dma.done.wait [#allocation9], 16  }
 0x136   :  { %305 = vsyncadd [#allocation9], 4294967280 }
 0x137   :  { %179 = vsyncpa [#allocation3], 1 }
 0x138   :  { %180 = vsyncpa [#allocation6], 1 }
 0x139   :  { %181 = vsyncpa [#allocation4], 1 }
 0x13a   :  { %182 = vsyncpa [#allocation9], 1 }

</bundles_post_ra>
